<compile_context>
chip_gen: v5e
topology: v5e:2x2
jax: 0.10.0
libtpu: 0.0.40
codegen_flags: <defaults>
</compile_context>

<pallas_src>
import functools

import jax
import jax.numpy as jnp
from jax.experimental import pallas as pl
from jax.experimental.pallas import tpu as pltpu


# --------------------------------------------------------------------------- #
# Kernels
# --------------------------------------------------------------------------- #
def _ff_glu_kernel_acc(x_ref, wp_ref, bp_ref, wo_ref, bo_ref, o_ref, acc_ref,
                       *, tile_k):
    """K-reduction step with an explicit f32 accumulator (non-f32 output dtype)."""
    k = pl.program_id(1)

    @pl.when(k == 0)
    def _init():
        acc_ref[...] = jnp.zeros_like(acc_ref)

    x = x_ref[...]
    # One wide MXU matmul over the packed [a_block | gate_block] columns.
    h = jnp.dot(x, wp_ref[...], preferred_element_type=jnp.float32)
    h = h + bp_ref[...].astype(jnp.float32)
    a = h[:, :tile_k]            # slice at a 128-lane boundary
    g = h[:, tile_k:]
    y = a * (g * jax.nn.sigmoid(g))          # GLU: a * SiLU(gate); sigmoid -> EUP

    acc_ref[...] += jnp.dot(y.astype(wo_ref.dtype), wo_ref[...],
                            preferred_element_type=jnp.float32)

    @pl.when(k == pl.num_programs(1) - 1)
    def _finalize():
        out = acc_ref[...] + bo_ref[...].astype(jnp.float32)
        o_ref[...] = out.astype(o_ref.dtype)


def _ff_glu_kernel_inplace(x_ref, wp_ref, bp_ref, wo_ref, bo_ref, o_ref,
                           *, tile_k):
    """f32 output: accumulate directly into the resident output block (no scratch)."""
    k = pl.program_id(1)

    @pl.when(k == 0)
    def _init():
        o_ref[...] = jnp.zeros_like(o_ref)

    x = x_ref[...]
    h = jnp.dot(x, wp_ref[...], preferred_element_type=jnp.float32)
    h = h + bp_ref[...].astype(jnp.float32)
    a = h[:, :tile_k]
    g = h[:, tile_k:]
    y = a * (g * jax.nn.sigmoid(g))

    o_ref[...] += jnp.dot(y.astype(wo_ref.dtype), wo_ref[...],
                          preferred_element_type=jnp.float32)

    @pl.when(k == pl.num_programs(1) - 1)
    def _finalize():
        o_ref[...] += bo_ref[...].astype(jnp.float32)


# --------------------------------------------------------------------------- #
# Helpers
# --------------------------------------------------------------------------- #
def _round_up(x, m):
    return (x + m - 1) // m * m


def _cdiv(a, b):
    return -(-a // b)


def _vmem_capacity_bytes():
    """Physical VMEM per TensorCore; conservative 64 MiB fallback (v7x)."""
    try:
        info = pltpu.get_tpu_info()
        cap = getattr(info, "vmem_capacity_bytes", None)
        if cap:
            return int(cap)
    except Exception:
        pass
    return 64 << 20


def _pick_tile_k(inner_pad0, requested):
    """inner_pad0 is a multiple of 128.  Return (tile_k, inner_pad) where tile_k is
    the largest multiple of 128 <= requested whose padded inner (round_up) wastes
    <= 12.5% extra work.  Always succeeds (128 divides inner_pad0 exactly)."""
    cap = max(128, min((requested // 128) * 128, inner_pad0))
    for cand in range(cap, 127, -128):
        padded = _round_up(inner_pad0, cand)
        if (padded - inner_pad0) * 8 <= inner_pad0:
            return cand, padded
    return 128, inner_pad0


def _vmem_budget(tile_m, tile_k, dim, dim_out, act_b, w_b, out_b, use_acc):
    two_tk = 2 * tile_k
    b = 2 * (tile_m * dim * act_b            # x tile (double-buffered)
             + dim * two_tk * w_b            # packed W_in block
             + two_tk * w_b                  # packed bias block
             + tile_k * dim_out * w_b        # W_out row block
             + dim_out * w_b                 # b_out
             + tile_m * dim_out * out_b)     # output tile
    b += 5 * tile_m * tile_k * 4             # f32 intermediates: h (2x), a, g, y
    if use_acc:
        b += tile_m * dim_out * 4            # f32 accumulator scratch
    return b


def _pack_glu_weights(w_in, b_in, inner, inner_pad, tile_k):
    """Pre-pack W_in / b_in so that for each K block the 'a' and 'gate' column
    blocks are adjacent:  packed[:, k*2tk : (k+1)*2tk] = [a_k | gate_k]."""
    dim = w_in.shape[0]
    n_k = inner_pad // tile_k
    wa, wg = w_in[:, :inner], w_in[:, inner:]
    ba, bg = b_in[:inner], b_in[inner:]
    if inner_pad != inner:
        pad = inner_pad - inner
        wa = jnp.pad(wa, ((0, 0), (0, pad)))
        wg = jnp.pad(wg, ((0, 0), (0, pad)))
        ba = jnp.pad(ba, ((0, pad),))
        bg = jnp.pad(bg, ((0, pad),))
    wa = wa.reshape(dim, n_k, tile_k)
    wg = wg.reshape(dim, n_k, tile_k)
    w_packed = jnp.concatenate([wa, wg], axis=-1).reshape(dim, n_k * 2 * tile_k)
    ba = ba.reshape(1, n_k, tile_k)
    bg = bg.reshape(1, n_k, tile_k)
    b_packed = jnp.concatenate([ba, bg], axis=-1).reshape(1, n_k * 2 * tile_k)
    return w_packed, b_packed


# --------------------------------------------------------------------------- #
# Wrapper
# --------------------------------------------------------------------------- #
def feed_forward_pallas(x, w_in, b_in, w_out, b_out, *,
                        tile_m=None, tile_k=None, matmul_dtype=None):
    """x: (B, N, dim) -> (B, N, dim_out). Fused GLU feed-forward, tiled over (M, inner)."""
    B, N, dim = x.shape
    two_inner = w_in.shape[1]
    inner = two_inner // 2
    dim_out = w_out.shape[1]
    assert w_in.shape == (dim, two_inner)
    assert b_in.shape == (two_inner,)
    assert w_out.shape == (inner, dim_out)
    assert b_out.shape == (dim_out,)

    out_dtype = x.dtype
    use_acc = jnp.dtype(out_dtype) != jnp.dtype(jnp.float32)

    M = B * N
    x2 = x.reshape(M, dim)

    if matmul_dtype is not None:
        x2 = x2.astype(matmul_dtype)
        w_in = w_in.astype(matmul_dtype)
        w_out = w_out.astype(matmul_dtype)

    # --- generation-aware tile defaults --------------------------------------
    vmem_cap = _vmem_capacity_bytes()
    big_vmem = vmem_cap >= (100 << 20)           # v5e/v6e (128 MiB) vs v7x (64 MiB)
    if tile_m is None:
        tile_m = 1024 if big_vmem else 512
    if tile_k is None:
        tile_k = 1024 if big_vmem else 512

    # --- M tiling -------------------------------------------------------------
    tile_m = max(8, min(_round_up(tile_m, 8), _round_up(M, 8)))
    # Keep both TensorCores busy on megacore parts: prefer >=2 M tiles for medium M.
    if M > 512 and _cdiv(M, tile_m) == 1:
        tile_m = _round_up(_cdiv(M, 2), 8)

    # --- inner (hidden) tiling: pad to a lane-aligned multiple of tile_k -------
    inner_pad0 = _round_up(inner, 128)
    tile_k, inner_pad = _pick_tile_k(inner_pad0, tile_k)

    act_b = jnp.dtype(x2.dtype).itemsize
    w_b = jnp.dtype(w_in.dtype).itemsize
    out_b = jnp.dtype(out_dtype).itemsize

    # Shrink tiles until the working set (incl. f32 intermediates) fits ~75% VMEM.
    usable = int(vmem_cap * 0.75)
    while _vmem_budget(tile_m, tile_k, dim, dim_out, act_b, w_b, out_b, use_acc) > usable:
        if tile_k > 256:
            tile_k, inner_pad = _pick_tile_k(inner_pad0, tile_k // 2)
        elif tile_m > 256:
            tile_m = _round_up(tile_m // 2, 8)
        else:
            break

    M_pad = _round_up(M, tile_m)
    if M_pad != M:
        x2 = jnp.pad(x2, ((0, M_pad - M), (0, 0)))

    # --- host-side pre-packing of weights -------------------------------------
    n_k = inner_pad // tile_k
    w_packed, b_packed = _pack_glu_weights(w_in, b_in, inner, inner_pad, tile_k)
    w_out_p = w_out if inner_pad == inner else jnp.pad(
        w_out, ((0, inner_pad - inner), (0, 0)))
    b_out2 = b_out.reshape(1, dim_out)

    grid = (M_pad // tile_m, n_k)                 # reduction (K) axis last
    n_m = M_pad // tile_m

    # --- VMEM limit (clamped to physical capacity) ----------------------------
    budget = _vmem_budget(tile_m, tile_k, dim, dim_out, act_b, w_b, out_b, use_acc)
    vmem_limit = int(min(max(budget + (8 << 20), 32 << 20), int(vmem_cap * 0.9)))

    # --- advisory cost estimate ------------------------------------------------
    flops = 2 * M_pad * dim * (2 * inner_pad) + 2 * M_pad * inner_pad * dim_out
    transcendentals = M_pad * inner_pad
    bytes_accessed = int(M_pad * dim * act_b
                         + n_m * (w_packed.nbytes + b_packed.nbytes
                                  + w_out_p.nbytes + b_out2.nbytes)
                         + M_pad * dim_out * out_b)
    cost = pl.CostEstimate(flops=flops, transcendentals=transcendentals,
                           bytes_accessed=bytes_accessed)

    if use_acc:
        kernel = functools.partial(_ff_glu_kernel_acc, tile_k=tile_k)
        scratch = (pltpu.VMEM((tile_m, dim_out), jnp.float32),)
    else:
        kernel = functools.partial(_ff_glu_kernel_inplace, tile_k=tile_k)
        scratch = ()

    out2 = pl.pallas_call(
        kernel,
        out_shape=jax.ShapeDtypeStruct((M_pad, dim_out), out_dtype),
        grid_spec=pltpu.PrefetchScalarGridSpec(
            num_scalar_prefetch=0,
            grid=grid,
            in_specs=[
                # x tile: constant over k (re-used across the K loop)
                pl.BlockSpec((tile_m, dim), lambda i, k: (i, 0)),
                # packed [a_k | gate_k] weight / bias column blocks
                pl.BlockSpec((dim, 2 * tile_k), lambda i, k: (0, k)),
                pl.BlockSpec((1, 2 * tile_k), lambda i, k: (0, k)),
                # W_out row block k, full output width (lane-dense output)
                pl.BlockSpec((tile_k, dim_out), lambda i, k: (k, 0)),
                pl.BlockSpec((1, dim_out), lambda i, k: (0, 0)),
            ],
            out_specs=pl.BlockSpec((tile_m, dim_out), lambda i, k: (i, 0)),
            scratch_shapes=scratch,
        ),
        compiler_params=pltpu.CompilerParams(
            dimension_semantics=("parallel", "arbitrary"),
            vmem_limit_bytes=vmem_limit,
        ),
        cost_estimate=cost,
    )(x2, w_packed, b_packed, w_out_p, b_out2)

    return out2[:M].reshape(B, N, dim_out)


# --------------------------------------------------------------------------- #
# Reference + synthetic init
# --------------------------------------------------------------------------- #
def init_feed_forward_params(key, dim, dim_out=None, mult=4, no_bias=False,
                             zero_init_output=True, dtype=jnp.float32):
    """Synthetic init matching FeedForward.__init__ shapes (glu=True, use_conv=False)."""
    inner_dim = int(dim * mult)
    dim_out = dim if dim_out is None else dim_out
    k1, k2, k3, k4 = jax.random.split(key, 4)
    w_in = (jax.random.normal(k1, (dim, 2 * inner_dim)) * 0.02).astype(dtype)
    b_in = (jax.random.normal(k2, (2 * inner_dim,)) * 0.02).astype(dtype)
    if zero_init_output:
        w_out = jnp.zeros((inner_dim, dim_out), dtype)
        b_out = jnp.zeros((dim_out,), dtype)
    else:
        w_out = (jax.random.normal(k3, (inner_dim, dim_out)) * 0.02).astype(dtype)
        b_out = (jax.random.normal(k4, (dim_out,)) * 0.02).astype(dtype)
    if no_bias:
        b_out = jnp.zeros((dim_out,), dtype)
    return w_in, b_in, w_out, b_out


def feed_forward_reference(x, w_in, b_in, w_out, b_out):
    xf = x.astype(jnp.float32)
    h = xf @ w_in.astype(jnp.float32) + b_in.astype(jnp.float32)
    inner = w_out.shape[0]
    a, gate = h[..., :inner], h[..., inner:]
    y = a * (gate * jax.nn.sigmoid(gate))
    return y @ w_out.astype(jnp.float32) + b_out.astype(jnp.float32)


if __name__ == "__main__":
    key = jax.random.PRNGKey(0)
    B, N, dim, mult = 2, 8, 32, 4            # inner = 128 -> one clean 128-wide K block

    kx, kp = jax.random.split(key)
    x = jax.random.normal(kx, (B, N, dim), jnp.float32)

    w_in, b_in, w_out, b_out = init_feed_forward_params(
        kp, dim, mult=mult, no_bias=False, zero_init_output=False)

    # --- f32 path (accumulates in-place into the f32 output block) ---
    out = jax.block_until_ready(feed_forward_pallas(x, w_in, b_in, w_out, b_out))
    ref = feed_forward_reference(x, w_in, b_in, w_out, b_out)
    assert out.shape == (B, N, dim)
    assert jnp.allclose(out, ref, atol=1e-5, rtol=1e-5), "f32 mismatch vs reference"

    # --- bf16 weights/activations with f32 accumulation (scratch accumulator path) ---
    xb = x.astype(jnp.bfloat16)
    wb_in, bb_in = w_in.astype(jnp.bfloat16), b_in.astype(jnp.bfloat16)
    wb_out, bb_out = w_out.astype(jnp.bfloat16), b_out.astype(jnp.bfloat16)
    out_bf = jax.block_until_ready(feed_forward_pallas(xb, wb_in, bb_in, wb_out, bb_out))
    ref_bf = feed_forward_reference(xb, wb_in, bb_in, wb_out, bb_out)
    assert jnp.allclose(out_bf.astype(jnp.float32), ref_bf, atol=2e-2, rtol=2e-2), \
        "bf16 mismatch vs reference"

    # --- padded-M path (flattened length not a multiple of the tile) ---
    x_odd = jax.random.normal(kx, (B, 7, dim), jnp.float32)    # M = 14 -> padded to 16
    out_odd = jax.block_until_ready(feed_forward_pallas(x_odd, w_in, b_in, w_out, b_out))
    ref_odd = feed_forward_reference(x_odd, w_in, b_in, w_out, b_out)
    assert out_odd.shape == (B, 7, dim)
    assert jnp.allclose(out_odd, ref_odd, atol=1e-5, rtol=1e-5), "padded-M mismatch"

    # --- inner dim NOT a multiple of 128 (exercises zero-padded inner tiling) ---
    dim2 = 24                                                   # inner = 96 -> padded to 128
    x2_in = jax.random.normal(kx, (2, 5, dim2), jnp.float32)
    w_in2, b_in2, w_out2, b_out2 = init_feed_forward_params(
        kp, dim2, mult=4, no_bias=False, zero_init_output=False)
    out2 = jax.block_until_ready(
        feed_forward_pallas(x2_in, w_in2, b_in2, w_out2, b_out2))
    ref2 = feed_forward_reference(x2_in, w_in2, b_in2, w_out2, b_out2)
    assert jnp.allclose(out2, ref2, atol=1e-5, rtol=1e-5), "padded-inner mismatch"

    # --- f32 caller opting into bf16 MXU operands (f32 accumulation) ---
    out_mx = jax.block_until_ready(
        feed_forward_pallas(x, w_in, b_in, w_out, b_out, matmul_dtype=jnp.bfloat16))
    assert jnp.allclose(out_mx, ref, atol=2e-2, rtol=2e-2), "bf16-MXU mismatch"

    # --- default zero_init_output=True configuration (output must be exactly zero) ---
    w_in0, b_in0, w_out0, b_out0 = init_feed_forward_params(
        kp, dim, mult=mult, no_bias=False, zero_init_output=True)
    out0 = jax.block_until_ready(feed_forward_pallas(x, w_in0, b_in0, w_out0, b_out0))
    assert jnp.allclose(out0, jnp.zeros_like(out0))

    print("KERNEL_OK")
</pallas_src>

<mosaic_0001>
module attributes {stable_mosaic.version = 11 : i64} {
  func.func @_ff_glu_kernel_inplace(%arg0: i32, %arg1: i32, %arg2: memref<16x32xf32, #tpu.memory_space<vmem>>, %arg3: memref<32x256xf32, #tpu.memory_space<vmem>>, %arg4: memref<1x256xf32, #tpu.memory_space<vmem>>, %arg5: memref<128x32xf32, #tpu.memory_space<vmem>>, %arg6: memref<1x32xf32, #tpu.memory_space<vmem>>, %arg7: memref<16x32xf32, #tpu.memory_space<vmem>>) attributes {dimension_semantics = [#tpu.dimension_semantics<parallel>, #tpu.dimension_semantics<arbitrary>], iteration_bounds = array<i64: 1, 1>, scalar_prefetch = 0 : i64, scratch_operands = 0 : i64, tpu.core_type = #tpu.core_type<tc>, window_params = [{transform_indices = @transform_0, window_bounds = array<i64: 16, 32>}, {transform_indices = @transform_1, window_bounds = array<i64: 32, 256>}, {transform_indices = @transform_2, window_bounds = array<i64: 1, 256>}, {transform_indices = @transform_3, window_bounds = array<i64: 128, 32>}, {pipeline_mode = #tpu.pipeline_mode<synchronous>, transform_indices = @transform_4, window_bounds = array<i64: 1, 32>}, {transform_indices = @transform_5, window_bounds = array<i64: 16, 32>}]} {
    %c0_i32 = arith.constant 0 : i32
    %0 = arith.cmpi eq, %arg1, %c0_i32 : i32
    %1 = arith.extui %0 : i1 to i32
    %c0_i32_0 = arith.constant 0 : i32
    %2 = arith.cmpi ne, %1, %c0_i32_0 : i32
    scf.if %2 {
      %cst_16 = arith.constant 0.000000e+00 : f32
      %26 = vector.broadcast %cst_16 : f32 to vector<16x32xf32>
      %c0_17 = arith.constant 0 : index
      %c0_18 = arith.constant 0 : index
      %27 = vector.load %arg7[%c0_17, %c0_18] : memref<16x32xf32, #tpu.memory_space<vmem>>, vector<16x32xf32>
      tpu.vector_store %arg7[%c0_17, %c0_18], %26 {strides = array<i32>} : memref<16x32xf32, #tpu.memory_space<vmem>>, vector<16x32xf32>,
    } else {
    }
    %c0 = arith.constant 0 : index
    %c0_1 = arith.constant 0 : index
    %3 = vector.load %arg2[%c0, %c0_1] : memref<16x32xf32, #tpu.memory_space<vmem>>, vector<16x32xf32>
    %c0_2 = arith.constant 0 : index
    %c0_3 = arith.constant 0 : index
    %4 = vector.load %arg3[%c0_2, %c0_3] : memref<32x256xf32, #tpu.memory_space<vmem>>, vector<32x256xf32>
    %cst = arith.constant dense<0.000000e+00> : vector<16x256xf32>
    %5 = tpu.matmul %3, %4, %cst {dimension_numbers = #tpu.dot_dimension_numbers<[1], [0], [0], [1], [0, 0, 1, 1], [], []>} : vector<16x32xf32>, vector<32x256xf32>, vector<16x256xf32> -> vector<16x256xf32>
    %c0_4 = arith.constant 0 : index
    %c0_5 = arith.constant 0 : index
    %6 = vector.load %arg4[%c0_4, %c0_5] : memref<1x256xf32, #tpu.memory_space<vmem>>, vector<1x256xf32>
    %7 = vector.broadcast %6 : vector<1x256xf32> to vector<16x256xf32>
    %8 = arith.addf %5, %7 : vector<16x256xf32>
    %9 = vector.extract_strided_slice %8 {offsets = [0, 0], sizes = [16, 128], strides = [1, 1]} : vector<16x256xf32> to vector<16x128xf32>
    %10 = vector.extract_strided_slice %8 {offsets = [0, 128], sizes = [16, 128], strides = [1, 1]} : vector<16x256xf32> to vector<16x128xf32>
    %11 = arith.negf %10 : vector<16x128xf32>
    %12 = math.exp %11 : vector<16x128xf32>
    %cst_6 = arith.constant 1.000000e+00 : f32
    %13 = vector.broadcast %cst_6 : f32 to vector<16x128xf32>
    %14 = arith.addf %13, %12 : vector<16x128xf32>
    %15 = arith.divf %13, %14 : vector<16x128xf32>
    %16 = arith.mulf %10, %15 : vector<16x128xf32>
    %17 = arith.mulf %9, %16 : vector<16x128xf32>
    %c0_7 = arith.constant 0 : index
    %c0_8 = arith.constant 0 : index
    %18 = vector.load %arg7[%c0_7, %c0_8] : memref<16x32xf32, #tpu.memory_space<vmem>>, vector<16x32xf32>
    %c0_9 = arith.constant 0 : index
    %c0_10 = arith.constant 0 : index
    %19 = vector.load %arg5[%c0_9, %c0_10] : memref<128x32xf32, #tpu.memory_space<vmem>>, vector<128x32xf32>
    %cst_11 = arith.constant dense<0.000000e+00> : vector<16x32xf32>
    %20 = tpu.matmul %17, %19, %cst_11 {dimension_numbers = #tpu.dot_dimension_numbers<[1], [0], [0], [1], [0, 0, 1, 1], [], []>} : vector<16x128xf32>, vector<128x32xf32>, vector<16x32xf32> -> vector<16x32xf32>
    %21 = arith.addf %18, %20 : vector<16x32xf32>
    %c0_12 = arith.constant 0 : index
    %c0_13 = arith.constant 0 : index
    %22 = vector.load %arg7[%c0_12, %c0_13] : memref<16x32xf32, #tpu.memory_space<vmem>>, vector<16x32xf32>
    tpu.vector_store %arg7[%c0_12, %c0_13], %21 {strides = array<i32>} : memref<16x32xf32, #tpu.memory_space<vmem>>, vector<16x32xf32>,
    %c0_i32_14 = arith.constant 0 : i32
    %23 = arith.cmpi eq, %arg1, %c0_i32_14 : i32
    %24 = arith.extui %23 : i1 to i32
    %c0_i32_15 = arith.constant 0 : i32
    %25 = arith.cmpi ne, %24, %c0_i32_15 : i32
    scf.if %25 {
      %c0_16 = arith.constant 0 : index
      %c0_17 = arith.constant 0 : index
      %26 = vector.load %arg7[%c0_16, %c0_17] : memref<16x32xf32, #tpu.memory_space<vmem>>, vector<16x32xf32>
      %c0_18 = arith.constant 0 : index
      %c0_19 = arith.constant 0 : index
      %27 = vector.load %arg6[%c0_18, %c0_19] : memref<1x32xf32, #tpu.memory_space<vmem>>, vector<1x32xf32>
      %28 = vector.broadcast %27 : vector<1x32xf32> to vector<16x32xf32>
      %29 = arith.addf %26, %28 : vector<16x32xf32>
      %c0_20 = arith.constant 0 : index
      %c0_21 = arith.constant 0 : index
      %30 = vector.load %arg7[%c0_20, %c0_21] : memref<16x32xf32, #tpu.memory_space<vmem>>, vector<16x32xf32>
      tpu.vector_store %arg7[%c0_20, %c0_21], %29 {strides = array<i32>} : memref<16x32xf32, #tpu.memory_space<vmem>>, vector<16x32xf32>,
    } else {
    }
    return
  }
  func.func @transform_0(%arg0: i32, %arg1: i32) -> (i32, i32) {
    %c0_i32 = arith.constant 0 : i32
    %c0_i32_0 = arith.constant 0 : i32
    return %arg0, %c0_i32 : i32, i32
  }
  func.func @transform_1(%arg0: i32, %arg1: i32) -> (i32, i32) {
    %c0_i32 = arith.constant 0 : i32
    %c0_i32_0 = arith.constant 0 : i32
    return %c0_i32, %arg1 : i32, i32
  }
  func.func @transform_2(%arg0: i32, %arg1: i32) -> (i32, i32) {
    %c0_i32 = arith.constant 0 : i32
    %c0_i32_0 = arith.constant 0 : i32
    return %c0_i32, %arg1 : i32, i32
  }
  func.func @transform_3(%arg0: i32, %arg1: i32) -> (i32, i32) {
    %c0_i32 = arith.constant 0 : i32
    %c0_i32_0 = arith.constant 0 : i32
    return %arg1, %c0_i32 : i32, i32
  }
  func.func @transform_4(%arg0: i32, %arg1: i32) -> (i32, i32) {
    %c0_i32 = arith.constant 0 : i32
    %c0_i32_0 = arith.constant 0 : i32
    %c0_i32_1 = arith.constant 0 : i32
    return %c0_i32, %c0_i32_0 : i32, i32
  }
  func.func @transform_5(%arg0: i32, %arg1: i32) -> (i32, i32) {
    %c0_i32 = arith.constant 0 : i32
    %c0_i32_0 = arith.constant 0 : i32
    return %arg0, %c0_i32 : i32, i32
  }
}

</mosaic_0001>

<bundles_post_ra>
// kernel: tpu_custom_call.1
= control target key start
LH: loop header
LB: loop body
LE: loop exit
PB: predicated region body
PF: predicated region fallthrough
CT: control target
= control target key end

     0   :  { %s411_s0 = inlined_call_operand.vmem [shape: f32[16,32], index: 0, kind: input, shape index: {}]   ;;  %s412_s1 = inlined_call_operand.vmem [shape: f32[32,256], index: 1, kind: input, shape index: {}]   ;;  %s413_s2 = inlined_call_operand.vmem [shape: f32[1,256], index: 2, kind: input, shape index: {}]   ;;  %s414_s3 = inlined_call_operand.vmem [shape: f32[128,32], index: 3, kind: input, shape index: {}]   ;;  %s415_s4 = inlined_call_operand.vmem [shape: f32[1,32], index: 4, kind: input, shape index: {}]   ;;  %s416_s5 = inlined_call_operand.hbm [shape: f32[16,32], index: 5, kind: output, shape index: {}]  }
   0x1   :  { %v37_v0 = vld [vmem:[%s412_s1 + $0x38] sm:$0xff]  ;;  %v35_v1 = vld [vmem:[%s412_s1 + $0x28] sm:$0xff]  ;;  %v36_v3 = vld [vmem:[%s412_s1 + $0x30] sm:$0xff] }
   0x2   :  { %86 = vmatpush.msra.mxu1 %v37_v0  ;;  %v33_v2 = vld [vmem:[%s412_s1 + $0x18] sm:$0xff]  ;;  %v34_v4 = vld [vmem:[%s412_s1 + $0x20] sm:$0xff]  ;;  %63 = vmatpush.msra.mxu0 %v36_v3  ;;  %v31_v5 = vld [vmem:[%s412_s1 + $0x8] sm:$0xff] }
   0x3   :  { %v32_v6 = vld [vmem:[%s412_s1 + $0x10] sm:$0xff] }
   0x4   :  { %87 = vmatpush.msra.mxu1 %v35_v1 }
   0x5   :  { %10 = vsyncpa [#allocation3], 0  ;;  %vm25_vm0 = vcmask 261120   ;;  %v28_v7 = vld [vmem:[%s411_s0] sm:$0xff]  ;;  %64 = vmatpush.msra.mxu0 %v34_v4  ;;  %v29_v9 = vld [vmem:[%s411_s0 + $0x8] sm:$0xff]  ;;  %v276_v36 = vmov 0.0  }
   0x6   :  { %88 = vmatpush.msra.mxu1 %v33_v2  ;;  %v30_v8 = vld [vmem:[%s412_s1] sm:$0xff]  ;;  %v156_v10 = vld [vmem:[%s414_s3 + $0x78] sm:$0xff]  ;;  %v155_v11 = vld [vmem:[%s414_s3 + $0x70] sm:$0xff]  ;;  %26 = vst.msk [vmem:[#allocation2] sm:$0xff] %vm25_vm0, %v276_v36  ;;  %s277_s18 = smov [#allocation2]   ;;  %s203_s22 = sshll.u32 %s416_s5, 4  ;;  %s204_s22 = int_to_ptr.hbm [resolvable:$true] %s203_s22 }
   0x7   :  { %65 = vmatpush.msra.mxu0 %v32_v6  ;;  %157 = vmatpush.msra.mxu2 %v156_v10  ;;  %v154_v12 = vld [vmem:[%s414_s3 + $0x68] sm:$0xff]  ;;  %v153_v13 = vld [vmem:[%s414_s3 + $0x60] sm:$0xff]  ;;  %v152_v14 = vld [vmem:[%s414_s3 + $0x58] sm:$0xff]  ;;  %27 = vst.msk [vmem:[#allocation2 + $0x8] sm:$0xff] %vm25_vm0, %v276_v36  ;;  %s201_s19 = sshll.u32 %s277_s18, 4  ;;  %s279_s23 = smov 8   ;;  %s202_s19 = int_to_ptr.vmem [resolvable:$true] %s201_s19 }
   0x8   :  { %89 = vmatpush.msra.mxu1 %v31_v5  ;;  %221 = vmatpush.msra.mxu3 %v156_v10  ;;  %v151_v15 = vld [vmem:[%s414_s3 + $0x50] sm:$0xff]  ;;  %v150_v16 = vld [vmem:[%s414_s3 + $0x48] sm:$0xff]  ;;  %v149_v17 = vld [vmem:[%s414_s3 + $0x40] sm:$0xff] }
   0x9   :  { %217 = vmatmul.msk.f32.vlgmr.msra.gmra.mxu1 %vm25_vm0, %v28_v7  ;;  %66 = vmatpush.msra.mxu0 %v30_v8  ;;  %v148_v18 = vld [vmem:[%s414_s3 + $0x38] sm:$0xff]  ;;  %v147_v19 = vld [vmem:[%s414_s3 + $0x30] sm:$0xff]  ;;  %v146_v20 = vld [vmem:[%s414_s3 + $0x28] sm:$0xff] }
   0xa   :  { %215 = vmatmul.msk.f32.vlgmr.msra.gmra.mxu0 %vm25_vm0, %v28_v7  ;;  %158 = vmatpush.msra.mxu2 %v155_v11  ;;  %v145_v21 = vld [vmem:[%s414_s3 + $0x20] sm:$0xff]  ;;  %v144_v23 = vld [vmem:[%s414_s3 + $0x18] sm:$0xff]  ;;  %v143_v25 = vld [vmem:[%s414_s3 + $0x10] sm:$0xff] }
   0xb   :  { %222 = vmatpush.msra.mxu3 %v155_v11  ;;  %v383_v22 = vld [vmem:[%s413_s2] sm:$0x3]  ;;  %v142_v26 = vld [vmem:[%s414_s3 + $0x8] sm:$0xff] }
   0xc   :  { %159 = vmatpush.msra.mxu2 %v154_v12  ;;  %v41_v24 = vperm.slane %v383_v22, 1  ;;  %v141_v29 = vld [vmem:[%s414_s3] sm:$0xff]  ;;  %v40_v46 = vperm.slane %v383_v22, 0 }
   0xd   :  { %223 = vmatpush.msra.mxu3 %v154_v12  ;;  %v139_v4 = vld [vmem:[#allocation2] sm:$0xff] }
   0xe   :  { %160 = vmatpush.msra.mxu2 %v153_v13  ;;  %v140_v7 = vld [vmem:[#allocation2 + $0x8] sm:$0xff]  ;;  %v241_v8 = vld [vmem:[%s415_s4] ss:$0 sm:$0xff]  ;;  %s278_s4 = smov 128  }
   0xf   :  { %224 = vmatpush.msra.mxu3 %v153_v13 }
  0x10   :  { %161 = vmatpush.msra.mxu2 %v152_v14 }
  0x11   :  { %218 = vmatmul.msk.f32.gmra.mxu1 %vm25_vm0, %v29_v9  ;;  %225 = vmatpush.msra.mxu3 %v152_v14 }
  0x12   :  { %216 = vmatmul.msk.f32.gmra.mxu0 %vm25_vm0, %v29_v9  ;;  %162 = vmatpush.msra.mxu2 %v151_v15 }
  0x13   :  { %226 = vmatpush.msra.mxu3 %v151_v15 }
  0x14   :  { %163 = vmatpush.msra.mxu2 %v150_v16 }
  0x15   :  { %227 = vmatpush.msra.mxu3 %v150_v16 }
  0x16   :  { %164 = vmatpush.msra.mxu2 %v149_v17 }
  0x17   :  { %228 = vmatpush.msra.mxu3 %v149_v17 }
  0x18   :  { %165 = vmatpush.msra.mxu2 %v148_v18 }
  0x19   :  { %229 = vmatpush.msra.mxu3 %v148_v18 }
  0x1a   :  { %166 = vmatpush.msra.mxu2 %v147_v19 }
  0x1b   :  { %230 = vmatpush.msra.mxu3 %v147_v19 }
  0x1c   :  { %167 = vmatpush.msra.mxu2 %v146_v20 }
  0x1d   :  { %231 = vmatpush.msra.mxu3 %v146_v20 }
  0x1e   :  { %168 = vmatpush.msra.mxu2 %v145_v21 }
  0x1f   :  { %232 = vmatpush.msra.mxu3 %v145_v21 }
  0x20   :  { %169 = vmatpush.msra.mxu2 %v144_v23 }
  0x21   :  { %233 = vmatpush.msra.mxu3 %v144_v23 }
  0x22   :  { %170 = vmatpush.msra.mxu2 %v143_v25 }
  0x23   :  { %234 = vmatpush.msra.mxu3 %v143_v25 }
  0x24   :  { %171 = vmatpush.msra.mxu2 %v142_v26 }
  0x25   :  { %235 = vmatpush.msra.mxu3 %v142_v26 }
  0x26   :  { %172 = vmatpush.msra.mxu2 %v141_v29 }
  0x27   :  { %236 = vmatpush.msra.mxu3 %v141_v29 }
  0x86   :  { %v91_v27 = vpop.f32.mrf.mxu1 }
  0x87   :  { %v92_v28 = vadd.f32 %v91_v27, %v41_v24  ;;  %v68_v43 = vpop.f32.mrf.mxu0 }
  0x88   :  { %v69_v52 = vadd.f32 %v68_v43, %v40_v46 }
  0x89   :  { %v219_v30 = vmul.f32 -1.442695, %v92_v28 }
  0x8b   :  { %242 = vpow2.f32 %v219_v30 }
  0x8e   :  { %v94_v31 = vpop.f32.mrf.mxu1 }
  0x8f   :  { %v95_v32 = vadd.f32 %v94_v31, %v41_v24  ;;  %v71_v60 = vpop.f32.mrf.mxu0 }
  0x90   :  { %v72_v0 = vadd.f32 %v71_v60, %v40_v46 }
  0x91   :  { %v243_v33 = vpop.eup %242  ;;  %v220_v34 = vmul.f32 -1.442695, %v95_v32 }
  0x92   :  { %v103_v35 = vadd.f32 1.0, %v243_v33 }
  0x93   :  { %244 = vpow2.f32 %v220_v34 }
  0x94   :  { %246 = vrcp.f32 %v103_v35  ;;  %v116_v42 = vand.u32 2147483648, %v103_v35  ;;  %v114_v45 = vand.u32 2147483647, %v103_v35  ;;  %vm110_vm2 = vweird.f32 %v103_v35 }
  0x96   :  { %v117_v49 = vor.u32 1.1754944e-38, %v116_v42  ;;  %vm115_vm4 = vcmp.eq.f32.partialorder %v114_v45, 8.507059e+37 }
  0x99   :  { %v245_v37 = vpop.eup %244 }
  0x9a   :  { %v247_v38 = vpop.eup %246  ;;  %v104_v39 = vadd.f32 1.0, %v245_v37 }
  0x9b   :  { %v106_v40 = vmul.f32 %v247_v38, %v103_v35  ;;  %vm111_vm1 = vweird.f32 %v247_v38 }
  0x9c   :  { %248 = vrcp.f32 %v104_v39  ;;  %vm112_vm3 = vmor %vm110_vm2, %vm111_vm1  ;;  %v131_v56 = vand.u32 2147483648, %v104_v39  ;;  %v129_v58 = vand.u32 2147483647, %v104_v39  ;;  %vm125_vm6 = vweird.f32 %v104_v39 }
  0x9d   :  { %v107_v41 = vsub.f32 1.0, %v106_v40 }
  0x9e   :  { %v132_v62 = vor.u32 1.1754944e-38, %v131_v56  ;;  %vm130_vm8 = vcmp.eq.f32.partialorder %v129_v58, 8.507059e+37 }
  0x9f   :  { %v108_v44 = vmul.f32 %v247_v38, %v107_v41 }
  0xa1   :  { %v109_v47 = vadd.f32 %v247_v38, %v108_v44 }
  0xa2   :  { %v249_v48 = vpop.eup %248 }
  0xa3   :  { %v113_v50 = vsel %vm112_vm3, %v247_v38, %v109_v47  ;;  %v121_v51 = vmul.f32 %v249_v48, %v104_v39  ;;  %vm126_vm5 = vweird.f32 %v249_v48 }
  0xa4   :  { %v118_v53 = vsel %vm115_vm4, %v117_v49, %v113_v50  ;;  %vm127_vm7 = vmor %vm125_vm6, %vm126_vm5 }
  0xa5   :  { %v135_v54 = vmul.f32 %v118_v53, %v92_v28  ;;  %v122_v55 = vsub.f32 1.0, %v121_v51 }
  0xa7   :  { %v123_v57 = vmul.f32 %v249_v48, %v122_v55  ;;  %v137_v59 = vmul.f32 %v135_v54, %v69_v52 }
  0xa9   :  { %v124_v61 = vadd.f32 %v249_v48, %v123_v57  ;;  %173 = vmatmul.f32.vlgmr.msra.gmra.mxu2 %v137_v59 }
  0xab   :  { %v128_v63 = vsel %vm127_vm7, %v249_v48, %v124_v61 }
  0xac   :  { %v133_v1 = vsel %vm130_vm8, %v132_v62, %v128_v63 }
  0xad   :  { %v136_v2 = vmul.f32 %v133_v1, %v95_v32 }
  0xaf   :  { %v138_v3 = vmul.f32 %v136_v2, %v72_v0 }
  0xb1   :  { %176 = vmatmul.f32.vlgmr.msra.gmra.mxu3 %v138_v3 }
 0x12c   :  { %v174_v5 = vpop.f32.mrf.mxu2 }
 0x12d   :  { %v180_v6 = vadd.f32 %v174_v5, %v139_v4 }
 0x12f   :  { %182 = vst.msk [vmem:[#allocation2] sm:$0xff] %vm25_vm0, %v180_v6 }
 0x134   :  { %v177_v9 = vpop.f32.mrf.mxu3 }
 0x135   :  { %v181_v10 = vadd.f32 %v177_v9, %v140_v7 }
 0x136   :  { %v187_v11 = vld [vmem:[#allocation2] sm:$0xff] }
 0x137   :  { %v193_v12 = vadd.f32 %v241_v8, %v187_v11  ;;  %183 = vst.msk [vmem:[#allocation2 + $0x8] sm:$0xff] %vm25_vm0, %v181_v10 }
 0x139   :  { %195 = vst.msk [vmem:[#allocation2] sm:$0xff] %vm25_vm0, %v193_v12 }
 0x13e   :  { %v188_v13 = vld [vmem:[#allocation2 + $0x8] sm:$0xff] }
 0x13f   :  { %v194_v14 = vadd.f32 %v241_v8, %v188_v13 }
 0x141   :  { %196 = vst.msk [vmem:[#allocation2 + $0x8] sm:$0xff] %vm25_vm0, %v194_v14 }
 0x142   :  { %209 = dma.vmem_to_hbm [thread:$0]  %s202_s19, 256, %s204_s22, [#allocation3], %s278_s4, %s278_s4, %s279_s23  }
 0x143   :  { %274 = dma.done.wait [#allocation3], 256  }
 0x144   :  { %275 = vsyncadd [#allocation3], 4294967040 }
 0x145   :  { %214 = vsyncpa [#allocation3], 1 }

</bundles_post_ra>
